<compile_context>
chip_gen: v6e
topology: v6e:2x2x1
jax: 0.10.0
libtpu: 0.0.40
codegen_flags: <defaults>
</compile_context>

<pallas_src>
import jax
import jax.numpy as jnp
from jax.experimental import pallas as pl
from jax.experimental.pallas import tpu as pltpu


# ---------------------------------------------------------------------------
# 0. The real Identity forward: zero cost, no kernel, no copy.
# ---------------------------------------------------------------------------
def identity(x: jax.Array) -> jax.Array:
    return x


# ---------------------------------------------------------------------------
# Budgets / per-generation dispatch.
# ---------------------------------------------------------------------------
_SMALL_BYTES = 1 << 20          # below this, a kernel launch costs more than the copy
_MAX_DMA_CHUNKS = 4             # 2-4 HBM->HBM DMAs in flight saturate the engines
_LANE = 128
_LANE_DENSE_COLS = (4096, 2048, 1024, 512, 256, 128)


def _chip_plan():
    """Return (block_bytes, vmem_limit_bytes, balance_two_cores) for this TPU."""
    block_bytes = 4 << 20       # ~85% of HBM roofline on v5e/v6e; 16 MiB footprint
    vmem_limit = 32 << 20       # explicit, above v5e's 16 MiB scoped default
    balance_cores = False
    try:
        info = pltpu.get_tpu_info()
        vmem_cap = int(getattr(info, "vmem_capacity_bytes", 128 << 20))
        if vmem_cap <= (64 << 20):
            # v7x: 64 MiB VMEM, ~3.2 TB/s HBM, 2 TensorCores per chip.
            block_bytes = 8 << 20      # halves the ~0.35 us/step overhead fraction
            vmem_limit = 48 << 20      # 2 bufs x (in+out) x 8 MiB = 32 MiB + headroom
            balance_cores = True
    except Exception:
        pass  # conservative defaults are valid on every generation
    return block_bytes, vmem_limit, balance_cores


# ---------------------------------------------------------------------------
# 1. HBM -> HBM DMA copy (primary materializing path).
# ---------------------------------------------------------------------------
def _flatten_2d_any(x: jax.Array) -> jax.Array:
    """Normalize to a 2-D view; the DMA path is layout/lane agnostic."""
    if x.ndim == 2:
        return x
    if x.ndim == 0:
        return x.reshape(1, 1)
    if x.ndim == 1:
        return x.reshape(1, -1)
    return x.reshape(-1, x.shape[-1])


def _dma_identity(x2: jax.Array) -> jax.Array:
    """Chunked HBM->HBM DMA copy: no VMEM roundtrip, no per-tile pipeline steps."""
    rows, _ = x2.shape
    n_chunks = int(min(_MAX_DMA_CHUNKS, rows, max(1, x2.nbytes // _SMALL_BYTES)))

    # Static, roughly even, 8-row-aligned chunk boundaries (DMA-friendly).
    bounds = [0]
    for i in range(1, n_chunks):
        bounds.append((rows * i // n_chunks) // 8 * 8)
    bounds.append(rows)
    chunks = [(bounds[i], bounds[i + 1] - bounds[i])
              for i in range(n_chunks) if bounds[i + 1] > bounds[i]]
    n_sems = len(chunks)

    def kernel(x_hbm, o_hbm, sem):
        live = []
        for i, (start, size) in enumerate(chunks):
            cp = pltpu.make_async_copy(
                x_hbm.at[pl.ds(start, size)],
                o_hbm.at[pl.ds(start, size)],
                sem.at[i],
            )
            cp.start()
            live.append(cp)
        for cp in live:
            cp.wait()

    return pl.pallas_call(
        kernel,
        out_shape=jax.ShapeDtypeStruct(x2.shape, x2.dtype),
        in_specs=[pl.BlockSpec(memory_space=pl.ANY)],
        out_specs=pl.BlockSpec(memory_space=pl.ANY),
        scratch_shapes=[pltpu.SemaphoreType.DMA((n_sems,))],
    )(x2)


def identity_pallas(x: jax.Array, *, force_copy: bool = False) -> jax.Array:
    """Materializing Identity. Prefer identity(x) unless a fresh buffer is needed."""
    if x.size == 0:
        return x
    if not force_copy and x.nbytes < _SMALL_BYTES:
        # The SLRNetwork use feeds tiny NCHW tensors: skip the launch entirely.
        return x
    x2 = _flatten_2d_any(x)
    return _dma_identity(x2).reshape(x.shape)


# ---------------------------------------------------------------------------
# 2. Tiled VMEM-roundtrip variant (kept; this is the shape to fuse compute into).
# ---------------------------------------------------------------------------
def _sublane(itemsize: int) -> int:
    # Native packed-sublane tile: f32 -> 8, bf16 -> 16, int8/fp8 -> 32.
    return max(8, 32 // max(1, int(itemsize)))


def _flatten_lane_dense(x: jax.Array):
    n = x.size
    for c in _LANE_DENSE_COLS:
        if n % c == 0:
            return x.reshape(n // c, c)
    return None


def _tile_plan(rows, cols, itemsize, block_bytes, sub):
    row_bytes = cols * itemsize
    if row_bytes <= block_bytes:
        # Full-width rows: contiguous HBM transfers, tile only the row axis.
        tile_c = cols
        tile_r = min(rows, max(1, block_bytes // row_bytes))
        if tile_r < rows:
            # Round DOWN to the dtype's packed-sublane tile: stores stay
            # unmasked AND the footprint never exceeds block_bytes.
            tile_r = max(sub, (tile_r // sub) * sub)
            tile_r = min(tile_r, rows)
    else:
        # One row exceeds the block budget: tile lanes in 128-aligned chunks.
        tile_r = min(rows, sub)
        tile_c = max(_LANE, (block_bytes // (tile_r * itemsize)) // _LANE * _LANE)
        tile_c = min(tile_c, cols)
    return tile_r, tile_c


def _balance_rows_for_two_cores(rows, tile_r, sub):
    """Shrink tile_r so the ('parallel',) row grid splits evenly across 2 TCs."""
    grid_r = -(-rows // tile_r)
    if tile_r >= rows or grid_r % 2 == 0:
        return tile_r
    cand = -(-rows // (grid_r + 1))
    cand = max(sub, -(-cand // sub) * sub)
    cand = min(cand, tile_r)
    if (-(-rows // cand)) % 2 == 0:
        return cand
    return tile_r


def _copy_tile_kernel(x_ref, o_ref):
    o_ref[...] = x_ref[...]


def identity_pallas_vmem(x: jax.Array, *, force_copy: bool = False) -> jax.Array:
    """Tiled VMEM-roundtrip copy (BlockSpec auto-pipelined, Buffered(2) default)."""
    if x.size == 0:
        return x
    if not force_copy and x.nbytes < _SMALL_BYTES:
        return x

    x2 = _flatten_lane_dense(x)
    if x2 is None:
        # Total size not a multiple of 128: lane-masked vst.msk would dominate;
        # the HBM->HBM DMA path is lane-agnostic, so delegate to it.
        return identity_pallas(x, force_copy=force_copy)

    rows, cols = x2.shape
    itemsize = jnp.dtype(x.dtype).itemsize
    block_bytes, vmem_limit, balance_cores = _chip_plan()
    sub = _sublane(itemsize)

    tile_r, tile_c = _tile_plan(rows, cols, itemsize, block_bytes, sub)
    if balance_cores and tile_c == cols:
        tile_r = _balance_rows_for_two_cores(rows, tile_r, sub)

    if not force_copy and tile_r >= rows and tile_c >= cols:
        return x  # whole array fits in one block: not worth a launch

    grid_r = pl.cdiv(rows, tile_r)
    grid_c = pl.cdiv(cols, tile_c)

    if grid_c == 1:
        grid = (grid_r,)
        in_spec = pl.BlockSpec((tile_r, tile_c), lambda i: (i, 0))
        out_spec = pl.BlockSpec((tile_r, tile_c), lambda i: (i, 0))
        dims = ("parallel",)
    else:
        grid = (grid_r, grid_c)
        in_spec = pl.BlockSpec((tile_r, tile_c), lambda i, j: (i, j))
        out_spec = pl.BlockSpec((tile_r, tile_c), lambda i, j: (i, j))
        dims = ("parallel", "parallel")

    out2 = pl.pallas_call(
        _copy_tile_kernel,
        out_shape=jax.ShapeDtypeStruct((rows, cols), x.dtype),
        grid_spec=pltpu.PrefetchScalarGridSpec(
            num_scalar_prefetch=0,
            grid=grid,
            in_specs=[in_spec],
            out_specs=out_spec,
        ),
        compiler_params=pltpu.CompilerParams(
            dimension_semantics=dims,
            vmem_limit_bytes=vmem_limit,
        ),
    )(x2)
    return out2.reshape(x.shape)


if __name__ == "__main__":
    key = jax.random.PRNGKey(0)
    # Tiny NCHW tensor, consistent with Identity's use inside SLRNetwork.
    x = jax.random.normal(key, (2, 4, 16, 16), dtype=jnp.float32)

    # 1) True Identity semantics: zero cost, no kernel launched.
    y0 = identity(x)
    assert y0 is x

    # 2) Default materializing path: tiny tensor -> fast path (no kernel).
    y1 = identity_pallas(x)
    assert y1.shape == x.shape and y1.dtype == x.dtype

    # 3) Forced HBM->HBM DMA copy kernel (primary Pallas path).
    y2 = identity_pallas(x, force_copy=True)
    jax.block_until_ready(y2)
    assert y2.shape == x.shape and y2.dtype == x.dtype
    assert bool(jnp.all(y2 == x))

    # 4) Forced tiled VMEM-roundtrip variant (kept for later compute fusion).
    y3 = identity_pallas_vmem(x, force_copy=True)
    jax.block_until_ready(y3)
    assert y3.shape == x.shape and y3.dtype == x.dtype
    assert bool(jnp.all(y3 == x))

    print("KERNEL_OK")
</pallas_src>

<mosaic_0001>
module attributes {stable_mosaic.version = 11 : i64} {
  func.func @kernel(%arg0: memref<128x16xf32, #tpu.memory_space<any>>, %arg1: memref<128x16xf32, #tpu.memory_space<any>>, %arg2: memref<1x!tpu.dma_semaphore, #tpu.memory_space<semaphore_mem>>) attributes {dimension_semantics = [], scalar_prefetch = 0 : i64, scratch_operands = 1 : i64, tpu.core_type = #tpu.core_type<tc>} {
    %c0_i32 = arith.constant 0 : i32
    %c0_i32_0 = arith.constant 0 : i32
    %c0_i32_1 = arith.constant 0 : i32
    %0 = tpu.memref_slice %arg0[%c0_i32_0, %c0_i32_1] : memref<128x16xf32, #tpu.memory_space<any>> -> memref<128x16xf32, #tpu.memory_space<any>>
    %c0_i32_2 = arith.constant 0 : i32
    %c0_i32_3 = arith.constant 0 : i32
    %1 = tpu.memref_slice %arg1[%c0_i32_2, %c0_i32_3] : memref<128x16xf32, #tpu.memory_space<any>> -> memref<128x16xf32, #tpu.memory_space<any>>
    %2 = tpu.memref_slice %arg2[%c0_i32] : memref<1x!tpu.dma_semaphore, #tpu.memory_space<semaphore_mem>> -> memref<1x!tpu.dma_semaphore, #tpu.memory_space<semaphore_mem>>
    %3 = tpu.memref_squeeze %2 : memref<1x!tpu.dma_semaphore, #tpu.memory_space<semaphore_mem>> -> memref<!tpu.dma_semaphore, #tpu.memory_space<semaphore_mem>>
    tpu.enqueue_dma source(%0 : memref<128x16xf32, #tpu.memory_space<any>>) target(%1 : memref<128x16xf32, #tpu.memory_space<any>>) target_semaphore(%3 : memref<!tpu.dma_semaphore, #tpu.memory_space<semaphore_mem>>)
    %c0_i32_4 = arith.constant 0 : i32
    %c0_i32_5 = arith.constant 0 : i32
    %c0_i32_6 = arith.constant 0 : i32
    %4 = tpu.memref_slice %arg0[%c0_i32_5, %c0_i32_6] : memref<128x16xf32, #tpu.memory_space<any>> -> memref<128x16xf32, #tpu.memory_space<any>>
    %c0_i32_7 = arith.constant 0 : i32
    %c0_i32_8 = arith.constant 0 : i32
    %5 = tpu.memref_slice %arg1[%c0_i32_7, %c0_i32_8] : memref<128x16xf32, #tpu.memory_space<any>> -> memref<128x16xf32, #tpu.memory_space<any>>
    %6 = tpu.memref_slice %arg2[%c0_i32_4] : memref<1x!tpu.dma_semaphore, #tpu.memory_space<semaphore_mem>> -> memref<1x!tpu.dma_semaphore, #tpu.memory_space<semaphore_mem>>
    %7 = tpu.memref_squeeze %6 : memref<1x!tpu.dma_semaphore, #tpu.memory_space<semaphore_mem>> -> memref<!tpu.dma_semaphore, #tpu.memory_space<semaphore_mem>>
    tpu.wait_dma2 semaphore(%7 : memref<!tpu.dma_semaphore, #tpu.memory_space<semaphore_mem>>) src(%4 : memref<128x16xf32, #tpu.memory_space<any>>) dst(%5 : memref<128x16xf32, #tpu.memory_space<any>>)
    return
  }
}

</mosaic_0001>

<bundles_post_ra>
// kernel: tpu_custom_call.1
= control target key start
LH: loop header
LB: loop body
LE: loop exit
PB: predicated region body
PF: predicated region fallthrough
CT: control target
= control target key end

     0   :  { %s205_s0 = inlined_call_operand.vmem [shape: f32[128,16], index: 0, kind: input, shape index: {}]   ;;  %s206_s1 = inlined_call_operand.vmem [shape: f32[128,16], index: 1, kind: output, shape index: {}]  }
   0x1   :  { %v39_v0 = vld [vmem:[%s205_s0] sm:$0xff]  ;;  %v41_v1 = vld [vmem:[%s205_s0 + $0x8] sm:$0xff]  ;;  %v43_v2 = vld [vmem:[%s205_s0 + $0x10] sm:$0xff] }
   0x2   :  { %40 = vst [vmem:[%s206_s1] sm:$0xff] %v39_v0  ;;  %42 = vst [vmem:[%s206_s1 + $0x8] sm:$0xff] %v41_v1  ;;  %v45_v3 = vld [vmem:[%s205_s0 + $0x18] sm:$0xff]  ;;  %v47_v4 = vld [vmem:[%s205_s0 + $0x20] sm:$0xff] }
   0x3   :  { %44 = vst [vmem:[%s206_s1 + $0x10] sm:$0xff] %v43_v2  ;;  %v49_v5 = vld [vmem:[%s205_s0 + $0x28] sm:$0xff]  ;;  %46 = vst [vmem:[%s206_s1 + $0x18] sm:$0xff] %v45_v3  ;;  %v51_v6 = vld [vmem:[%s205_s0 + $0x30] sm:$0xff] }
   0x4   :  { %48 = vst [vmem:[%s206_s1 + $0x20] sm:$0xff] %v47_v4  ;;  %50 = vst [vmem:[%s206_s1 + $0x28] sm:$0xff] %v49_v5  ;;  %v53_v7 = vld [vmem:[%s205_s0 + $0x38] sm:$0xff]  ;;  %v55_v8 = vld [vmem:[%s205_s0 + $0x40] sm:$0xff] }
   0x5   :  { %52 = vst [vmem:[%s206_s1 + $0x30] sm:$0xff] %v51_v6  ;;  %54 = vst [vmem:[%s206_s1 + $0x38] sm:$0xff] %v53_v7  ;;  %v57_v9 = vld [vmem:[%s205_s0 + $0x48] sm:$0xff]  ;;  %v59_v10 = vld [vmem:[%s205_s0 + $0x50] sm:$0xff] }
   0x6   :  { %56 = vst [vmem:[%s206_s1 + $0x40] sm:$0xff] %v55_v8  ;;  %v61_v11 = vld [vmem:[%s205_s0 + $0x58] sm:$0xff]  ;;  %58 = vst [vmem:[%s206_s1 + $0x48] sm:$0xff] %v57_v9  ;;  %v63_v12 = vld [vmem:[%s205_s0 + $0x60] sm:$0xff] }
   0x7   :  { %60 = vst [vmem:[%s206_s1 + $0x50] sm:$0xff] %v59_v10  ;;  %62 = vst [vmem:[%s206_s1 + $0x58] sm:$0xff] %v61_v11  ;;  %v65_v13 = vld [vmem:[%s205_s0 + $0x68] sm:$0xff]  ;;  %v67_v14 = vld [vmem:[%s205_s0 + $0x70] sm:$0xff] }
   0x8   :  { %64 = vst [vmem:[%s206_s1 + $0x60] sm:$0xff] %v63_v12  ;;  %66 = vst [vmem:[%s206_s1 + $0x68] sm:$0xff] %v65_v13  ;;  %v69_v15 = vld [vmem:[%s205_s0 + $0x78] sm:$0xff] }
   0x9   :  { %68 = vst [vmem:[%s206_s1 + $0x70] sm:$0xff] %v67_v14  ;;  %70 = vst [vmem:[%s206_s1 + $0x78] sm:$0xff] %v69_v15 }
   0xa   :  { %78 = vsyncadd [#allocation2], 2048 }
   0xb   :  { %97 = dma.done.wait [#allocation2], 2048 }
   0xc   :  { %98 = vsyncadd [#allocation2], 4294965248 }
   0xd   :  { %82 = vsyncmov [#allocation2] }
  0x10   :  { %s83_s12 = vpop.sfrf %82 }
  0x11   :  { %p96_p0 = scmp.ne.s32.totalorder %s83_s12, 0 }
  0x13   :  { %87 = shalt.err (%p96_p0)  }

</bundles_post_ra>
